<compile_context>
chip_gen: v6e
topology: v6e:2x2x1
jax: 0.10.0
libtpu: 0.0.40
codegen_flags: <defaults>
</compile_context>

<pallas_src>
import jax
import jax.numpy as jnp
from jax.experimental import pallas as pl
from jax.experimental.pallas import tpu as pltpu

# ---- problem sizes (small, consistent with an NCHW conv forward) ----
B, C, H, W = 2, 4, 16, 16
KH = KW = 3
COUT = 8           # conv output channels
EMB = 32           # embedding (feature) dim
NCLS = 4           # number of classes
SCALE_S = 16.0     # angular scale s
MARGIN_M = 0.2     # additive cosine margin m (CosFace-style)
EPS = 1e-6

HP = H + 2                 # padded height
WPC = (W + 2) * C          # 72  : (padded width) * channels, row layout
NROW = B * HP              # 36  : meaningful rows of the conv working set
NROW_PAD = 40              # rows padded to a multiple of 8 sublanes
LANES = W * COUT           # 128 : conv columns (x_out, cout) -> lane dense
BPAD = 8                   # batch padded to a full sublane tile
NCLS_PAD = 128             # class dim padded to a full lane tile


def _vmem():
    return pl.BlockSpec(memory_space=pltpu.MemorySpace.VMEM)


# ---------------- single fused kernel: conv + ReLU + GAP + FC + angular head ----------------
def fused_kernel(x_rows_ref, wband_ref, bconv_ref, pool_ref, wfc_ref, bfc_ref,
                 wclsT_ref, onehot_ref, gmask_ref, logits_ref, reg_ref):
    # ---- backbone: 3x3 conv (pad=1) as 3 row-shifted banded MXU matmuls ----
    # row r = (b, y); column m = x*COUT + o;  Wband[ky][(x+kx)*C+c, x*COUT+o] = w[o,c,ky,kx]
    acc = jnp.zeros((NROW, LANES), jnp.float32)
    for ky in range(KH):
        xk = x_rows_ref[pl.ds(ky, NROW), :]                     # (36, 72) rows shifted by ky
        acc = acc + jnp.dot(xk, wband_ref[ky],
                            preferred_element_type=jnp.float32)  # (36, 128)
    h = jnp.maximum(acc + bconv_ref[...], 0.0)                   # bias + ReLU

    # ---- global average pool + FC, both on the MXU (pool_mat already holds 1/(H*W)) ----
    pooled = jnp.dot(pool_ref[...], h, preferred_element_type=jnp.float32)   # (8, 128)
    feats = jnp.dot(pooled, wfc_ref[...], preferred_element_type=jnp.float32)
    feats = feats + bfc_ref[...]                                 # (8, 32)

    # ---- angular (CosFace-style) margin head ----
    f_n = feats * jax.lax.rsqrt(jnp.sum(feats * feats, axis=-1, keepdims=True) + EPS)
    wT = wclsT_ref[...]                                          # (32, 128), zero-padded classes
    w_n = wT * jax.lax.rsqrt(jnp.sum(wT * wT, axis=0, keepdims=True) + EPS)
    cos = jnp.dot(f_n, w_n, preferred_element_type=jnp.float32)  # (8, 128)
    onehot = onehot_ref[...]                                     # (8, 128)
    logits_ref[...] = SCALE_S * (cos - MARGIN_M * onehot)        # dense (8,128) store

    # ---- fairness regularizer: squared gap of target-class cosine between sens groups ----
    cos_t = jnp.sum(cos * onehot, axis=-1, keepdims=True)        # (8, 1)
    gm = gmask_ref[...]                                          # (8, 2): [sens, 1-sens], 0 on pad rows
    s1 = gm[:, 0:1]
    s0 = gm[:, 1:2]
    g1 = jnp.sum(cos_t * s1, axis=0, keepdims=True) * pl.reciprocal(
        jnp.sum(s1, axis=0, keepdims=True) + EPS, approx=True)
    g0 = jnp.sum(cos_t * s0, axis=0, keepdims=True) * pl.reciprocal(
        jnp.sum(s0, axis=0, keepdims=True) + EPS, approx=True)
    diff = g1 - g0                                               # (1, 1)
    reg_ref[...] = jnp.zeros((BPAD, NCLS_PAD), jnp.float32) + diff * diff


def fused_forward(x_rows, wband, bconv_t, pool_mat, wfc_exp, bfc, wclsT, onehot, gmask):
    return pl.pallas_call(
        fused_kernel,
        out_shape=(jax.ShapeDtypeStruct((BPAD, NCLS_PAD), jnp.float32),   # logits slab
                   jax.ShapeDtypeStruct((BPAD, NCLS_PAD), jnp.float32)),  # reg broadcast slab
        in_specs=[_vmem()] * 9,
        out_specs=(_vmem(), _vmem()),
    )(x_rows, wband, bconv_t, pool_mat, wfc_exp, bfc, wclsT, onehot, gmask)


# ---------------- params ----------------
def init_params(key):
    ks = jax.random.split(key, 5)
    return dict(
        w_conv=0.1 * jax.random.normal(ks[0], (COUT, C, KH, KW), jnp.float32),
        b_conv=0.01 * jax.random.normal(ks[1], (1, COUT), jnp.float32),
        w_fc=0.1 * jax.random.normal(ks[2], (COUT, EMB), jnp.float32),
        b_fc=0.01 * jax.random.normal(ks[3], (1, EMB), jnp.float32),
        w_cls=0.1 * jax.random.normal(ks[4], (NCLS, EMB), jnp.float32),
    )


# ---------------- forward (thin glue: layout transforms only) ----------------
@jax.jit
def network_forward(params, inputs, labels, sens):
    # input layout: NCHW -> padded NHWC row slab (one reshape, no 9x im2col inflation)
    x = jnp.transpose(inputs, (0, 2, 3, 1))                       # (B, H, W, C)
    x = jnp.pad(x, ((0, 0), (1, 1), (1, 1), (0, 0)))              # (B, 18, 18, C)
    x_rows = x.reshape(NROW, WPC)                                 # (36, 72)
    x_rows = jnp.pad(x_rows, ((0, NROW_PAD - NROW), (0, 0)))      # (40, 72)

    # banded conv weights: Wband[ky][(x+kx)*C+c, x*COUT+o] = w_conv[o, c, ky, kx]
    wt = jnp.transpose(params["w_conv"], (2, 3, 1, 0))            # (KH, KW, C, COUT)
    xp = jnp.arange(W + 2)
    xo = jnp.arange(W)
    kxm = xp[:, None] - xo[None, :]                               # (18, 16)
    valid = (kxm >= 0) & (kxm < KW)
    band = wt[:, jnp.clip(kxm, 0, KW - 1)]                        # (KH, 18, 16, C, COUT)
    band = band * valid[None, :, :, None, None].astype(jnp.float32)
    wband = jnp.transpose(band, (0, 1, 3, 2, 4)).reshape(KH, WPC, LANES)   # (3, 72, 128)

    bconv_t = jnp.tile(params["b_conv"], (1, W))                  # (1, 128)

    # pooling matrix: selects valid (y < H) rows per batch, scaled by 1/(H*W)
    r = jnp.arange(NROW)
    pool_mat = ((jnp.arange(BPAD)[:, None] == (r // HP)[None, :]) &
                ((r % HP) < H)[None, :]).astype(jnp.float32) / float(H * W)  # (8, 36)

    wfc_exp = jnp.tile(params["w_fc"], (W, 1))                    # (128, 32)

    wclsT = jnp.zeros((EMB, NCLS_PAD), jnp.float32).at[:, :NCLS].set(params["w_cls"].T)
    onehot = jnp.zeros((BPAD, NCLS_PAD), jnp.float32).at[jnp.arange(B), labels].set(1.0)
    sens_f = sens.astype(jnp.float32)
    gmask = jnp.zeros((BPAD, 2), jnp.float32)
    gmask = gmask.at[:B, 0].set(sens_f).at[:B, 1].set(1.0 - sens_f)

    logits_slab, reg_slab = fused_forward(
        x_rows, wband, bconv_t, pool_mat, wfc_exp, params["b_fc"], wclsT, onehot, gmask)
    return logits_slab[:B, :NCLS], reg_slab[0, 0]


if __name__ == "__main__":
    key = jax.random.PRNGKey(0)
    k_x, k_lab, k_sens, k_par = jax.random.split(key, 4)

    x = jax.random.normal(k_x, (B, C, H, W), jnp.float32)         # NCHW input
    labels = jax.random.randint(k_lab, (B,), 0, NCLS)
    sens = jax.random.randint(k_sens, (B,), 0, 2)
    params = init_params(k_par)

    outputs, reg_loss = network_forward(params, x, labels, sens)
    jax.block_until_ready((outputs, reg_loss))

    assert outputs.shape == (B, NCLS) and reg_loss.shape == ()
    print("KERNEL_OK")
</pallas_src>

<mosaic_0001>
module attributes {stable_mosaic.version = 11 : i64} {
  func.func @fused_kernel(%arg0: memref<40x72xf32, #tpu.memory_space<vmem>>, %arg1: memref<3x72x128xf32, #tpu.memory_space<vmem>>, %arg2: memref<1x128xf32, #tpu.memory_space<vmem>>, %arg3: memref<8x36xf32, #tpu.memory_space<vmem>>, %arg4: memref<128x32xf32, #tpu.memory_space<vmem>>, %arg5: memref<1x32xf32, #tpu.memory_space<vmem>>, %arg6: memref<32x128xf32, #tpu.memory_space<vmem>>, %arg7: memref<8x128xf32, #tpu.memory_space<vmem>>, %arg8: memref<8x2xf32, #tpu.memory_space<vmem>>, %arg9: memref<8x128xf32, #tpu.memory_space<vmem>>, %arg10: memref<8x128xf32, #tpu.memory_space<vmem>>) attributes {dimension_semantics = [], scalar_prefetch = 0 : i64, scratch_operands = 0 : i64, tpu.core_type = #tpu.core_type<tc>} {
    %cst = arith.constant 0.000000e+00 : f32
    %0 = vector.broadcast %cst : f32 to vector<36x128xf32>
    %c0 = arith.constant 0 : index
    %c0_0 = arith.constant 0 : index
    %1 = vector.load %arg0[%c0, %c0_0] : memref<40x72xf32, #tpu.memory_space<vmem>>, vector<36x72xf32>
    %c0_1 = arith.constant 0 : index
    %c0_2 = arith.constant 0 : index
    %c0_3 = arith.constant 0 : index
    %2 = vector.load %arg1[%c0_1, %c0_2, %c0_3] : memref<3x72x128xf32, #tpu.memory_space<vmem>>, vector<1x72x128xf32>
    %3 = vector.shape_cast %2 : vector<1x72x128xf32> to vector<72x128xf32>
    %cst_4 = arith.constant dense<0.000000e+00> : vector<36x128xf32>
    %4 = tpu.matmul %1, %3, %cst_4 {dimension_numbers = #tpu.dot_dimension_numbers<[1], [0], [0], [1], [0, 0, 1, 1], [], []>} : vector<36x72xf32>, vector<72x128xf32>, vector<36x128xf32> -> vector<36x128xf32>
    %5 = arith.addf %0, %4 : vector<36x128xf32>
    %c1 = arith.constant 1 : index
    %c0_5 = arith.constant 0 : index
    %6 = vector.load %arg0[%c1, %c0_5] : memref<40x72xf32, #tpu.memory_space<vmem>>, vector<36x72xf32>
    %c1_6 = arith.constant 1 : index
    %c0_7 = arith.constant 0 : index
    %c0_8 = arith.constant 0 : index
    %7 = vector.load %arg1[%c1_6, %c0_7, %c0_8] : memref<3x72x128xf32, #tpu.memory_space<vmem>>, vector<1x72x128xf32>
    %8 = vector.shape_cast %7 : vector<1x72x128xf32> to vector<72x128xf32>
    %cst_9 = arith.constant dense<0.000000e+00> : vector<36x128xf32>
    %9 = tpu.matmul %6, %8, %cst_9 {dimension_numbers = #tpu.dot_dimension_numbers<[1], [0], [0], [1], [0, 0, 1, 1], [], []>} : vector<36x72xf32>, vector<72x128xf32>, vector<36x128xf32> -> vector<36x128xf32>
    %10 = arith.addf %5, %9 : vector<36x128xf32>
    %c2 = arith.constant 2 : index
    %c0_10 = arith.constant 0 : index
    %11 = vector.load %arg0[%c2, %c0_10] : memref<40x72xf32, #tpu.memory_space<vmem>>, vector<36x72xf32>
    %c2_11 = arith.constant 2 : index
    %c0_12 = arith.constant 0 : index
    %c0_13 = arith.constant 0 : index
    %12 = vector.load %arg1[%c2_11, %c0_12, %c0_13] : memref<3x72x128xf32, #tpu.memory_space<vmem>>, vector<1x72x128xf32>
    %13 = vector.shape_cast %12 : vector<1x72x128xf32> to vector<72x128xf32>
    %cst_14 = arith.constant dense<0.000000e+00> : vector<36x128xf32>
    %14 = tpu.matmul %11, %13, %cst_14 {dimension_numbers = #tpu.dot_dimension_numbers<[1], [0], [0], [1], [0, 0, 1, 1], [], []>} : vector<36x72xf32>, vector<72x128xf32>, vector<36x128xf32> -> vector<36x128xf32>
    %15 = arith.addf %10, %14 : vector<36x128xf32>
    %c0_15 = arith.constant 0 : index
    %c0_16 = arith.constant 0 : index
    %16 = vector.load %arg2[%c0_15, %c0_16] : memref<1x128xf32, #tpu.memory_space<vmem>>, vector<1x128xf32>
    %17 = vector.broadcast %16 : vector<1x128xf32> to vector<36x128xf32>
    %18 = arith.addf %15, %17 : vector<36x128xf32>
    %cst_17 = arith.constant 0.000000e+00 : f32
    %19 = vector.broadcast %cst_17 : f32 to vector<36x128xf32>
    %20 = arith.maximumf %18, %19 : vector<36x128xf32>
    %c0_18 = arith.constant 0 : index
    %c0_19 = arith.constant 0 : index
    %21 = vector.load %arg3[%c0_18, %c0_19] : memref<8x36xf32, #tpu.memory_space<vmem>>, vector<8x36xf32>
    %cst_20 = arith.constant dense<0.000000e+00> : vector<8x128xf32>
    %22 = tpu.matmul %21, %20, %cst_20 {dimension_numbers = #tpu.dot_dimension_numbers<[1], [0], [0], [1], [0, 0, 1, 1], [], []>} : vector<8x36xf32>, vector<36x128xf32>, vector<8x128xf32> -> vector<8x128xf32>
    %c0_21 = arith.constant 0 : index
    %c0_22 = arith.constant 0 : index
    %23 = vector.load %arg4[%c0_21, %c0_22] : memref<128x32xf32, #tpu.memory_space<vmem>>, vector<128x32xf32>
    %cst_23 = arith.constant dense<0.000000e+00> : vector<8x32xf32>
    %24 = tpu.matmul %22, %23, %cst_23 {dimension_numbers = #tpu.dot_dimension_numbers<[1], [0], [0], [1], [0, 0, 1, 1], [], []>} : vector<8x128xf32>, vector<128x32xf32>, vector<8x32xf32> -> vector<8x32xf32>
    %c0_24 = arith.constant 0 : index
    %c0_25 = arith.constant 0 : index
    %25 = vector.load %arg5[%c0_24, %c0_25] : memref<1x32xf32, #tpu.memory_space<vmem>>, vector<1x32xf32>
    %26 = vector.broadcast %25 : vector<1x32xf32> to vector<8x32xf32>
    %27 = arith.addf %24, %26 : vector<8x32xf32>
    %28 = arith.mulf %27, %27 : vector<8x32xf32>
    %cst_26 = arith.constant dense<0.000000e+00> : vector<8xf32>
    %29 = vector.multi_reduction <add>, %28, %cst_26 [1] : vector<8x32xf32> to vector<8xf32>
    %30 = vector.shape_cast %29 : vector<8xf32> to vector<8x1xf32>
    %cst_27 = arith.constant 9.99999997E-7 : f32
    %31 = vector.broadcast %cst_27 : f32 to vector<8x1xf32>
    %32 = arith.addf %30, %31 : vector<8x1xf32>
    %33 = math.rsqrt %32 : vector<8x1xf32>
    %34 = vector.broadcast %33 : vector<8x1xf32> to vector<8x32xf32>
    %35 = arith.mulf %27, %34 : vector<8x32xf32>
    %c0_28 = arith.constant 0 : index
    %c0_29 = arith.constant 0 : index
    %36 = vector.load %arg6[%c0_28, %c0_29] : memref<32x128xf32, #tpu.memory_space<vmem>>, vector<32x128xf32>
    %37 = arith.mulf %36, %36 : vector<32x128xf32>
    %cst_30 = arith.constant dense<0.000000e+00> : vector<128xf32>
    %38 = vector.multi_reduction <add>, %37, %cst_30 [0] : vector<32x128xf32> to vector<128xf32>
    %39 = vector.shape_cast %38 : vector<128xf32> to vector<1x128xf32>
    %cst_31 = arith.constant 9.99999997E-7 : f32
    %40 = vector.broadcast %cst_31 : f32 to vector<1x128xf32>
    %41 = arith.addf %39, %40 : vector<1x128xf32>
    %42 = math.rsqrt %41 : vector<1x128xf32>
    %43 = vector.broadcast %42 : vector<1x128xf32> to vector<32x128xf32>
    %44 = arith.mulf %36, %43 : vector<32x128xf32>
    %cst_32 = arith.constant dense<0.000000e+00> : vector<8x128xf32>
    %45 = tpu.matmul %35, %44, %cst_32 {dimension_numbers = #tpu.dot_dimension_numbers<[1], [0], [0], [1], [0, 0, 1, 1], [], []>} : vector<8x32xf32>, vector<32x128xf32>, vector<8x128xf32> -> vector<8x128xf32>
    %c0_33 = arith.constant 0 : index
    %c0_34 = arith.constant 0 : index
    %46 = vector.load %arg7[%c0_33, %c0_34] : memref<8x128xf32, #tpu.memory_space<vmem>>, vector<8x128xf32>
    %cst_35 = arith.constant 2.000000e-01 : f32
    %47 = vector.broadcast %cst_35 : f32 to vector<8x128xf32>
    %48 = arith.mulf %47, %46 : vector<8x128xf32>
    %49 = arith.subf %45, %48 : vector<8x128xf32>
    %cst_36 = arith.constant 1.600000e+01 : f32
    %50 = vector.broadcast %cst_36 : f32 to vector<8x128xf32>
    %51 = arith.mulf %50, %49 : vector<8x128xf32>
    %c0_37 = arith.constant 0 : index
    %c0_38 = arith.constant 0 : index
    %52 = vector.load %arg9[%c0_37, %c0_38] : memref<8x128xf32, #tpu.memory_space<vmem>>, vector<8x128xf32>
    tpu.vector_store %arg9[%c0_37, %c0_38], %51 {strides = array<i32>} : memref<8x128xf32, #tpu.memory_space<vmem>>, vector<8x128xf32>,
    %53 = arith.mulf %45, %46 : vector<8x128xf32>
    %cst_39 = arith.constant dense<0.000000e+00> : vector<8xf32>
    %54 = vector.multi_reduction <add>, %53, %cst_39 [1] : vector<8x128xf32> to vector<8xf32>
    %55 = vector.shape_cast %54 : vector<8xf32> to vector<8x1xf32>
    %c0_40 = arith.constant 0 : index
    %c0_41 = arith.constant 0 : index
    %56 = vector.load %arg8[%c0_40, %c0_41] : memref<8x2xf32, #tpu.memory_space<vmem>>, vector<8x2xf32>
    %57 = vector.extract_strided_slice %56 {offsets = [0, 0], sizes = [8, 1], strides = [1, 1]} : vector<8x2xf32> to vector<8x1xf32>
    %58 = vector.extract_strided_slice %56 {offsets = [0, 1], sizes = [8, 1], strides = [1, 1]} : vector<8x2xf32> to vector<8x1xf32>
    %59 = arith.mulf %55, %57 : vector<8x1xf32>
    %cst_42 = arith.constant dense<0.000000e+00> : vector<1xf32>
    %60 = vector.multi_reduction <add>, %59, %cst_42 [0] : vector<8x1xf32> to vector<1xf32>
    %61 = vector.shape_cast %60 : vector<1xf32> to vector<1x1xf32>
    %cst_43 = arith.constant dense<0.000000e+00> : vector<1xf32>
    %62 = vector.multi_reduction <add>, %57, %cst_43 [0] : vector<8x1xf32> to vector<1xf32>
    %63 = vector.shape_cast %62 : vector<1xf32> to vector<1x1xf32>
    %cst_44 = arith.constant 9.99999997E-7 : f32
    %64 = vector.broadcast %cst_44 : f32 to vector<1x1xf32>
    %65 = arith.addf %63, %64 : vector<1x1xf32>
    %66 = tpu.reciprocal %65 {approx = true} : vector<1x1xf32> -> vector<1x1xf32>
    %67 = arith.mulf %61, %66 : vector<1x1xf32>
    %68 = arith.mulf %55, %58 : vector<8x1xf32>
    %cst_45 = arith.constant dense<0.000000e+00> : vector<1xf32>
    %69 = vector.multi_reduction <add>, %68, %cst_45 [0] : vector<8x1xf32> to vector<1xf32>
    %70 = vector.shape_cast %69 : vector<1xf32> to vector<1x1xf32>
    %cst_46 = arith.constant dense<0.000000e+00> : vector<1xf32>
    %71 = vector.multi_reduction <add>, %58, %cst_46 [0] : vector<8x1xf32> to vector<1xf32>
    %72 = vector.shape_cast %71 : vector<1xf32> to vector<1x1xf32>
    %cst_47 = arith.constant 9.99999997E-7 : f32
    %73 = vector.broadcast %cst_47 : f32 to vector<1x1xf32>
    %74 = arith.addf %72, %73 : vector<1x1xf32>
    %75 = tpu.reciprocal %74 {approx = true} : vector<1x1xf32> -> vector<1x1xf32>
    %76 = arith.mulf %70, %75 : vector<1x1xf32>
    %77 = arith.subf %67, %76 : vector<1x1xf32>
    %cst_48 = arith.constant 0.000000e+00 : f32
    %78 = vector.broadcast %cst_48 : f32 to vector<8x128xf32>
    %79 = arith.mulf %77, %77 : vector<1x1xf32>
    %80 = vector.broadcast %79 : vector<1x1xf32> to vector<8x128xf32>
    %81 = arith.addf %78, %80 : vector<8x128xf32>
    %c0_49 = arith.constant 0 : index
    %c0_50 = arith.constant 0 : index
    %82 = vector.load %arg10[%c0_49, %c0_50] : memref<8x128xf32, #tpu.memory_space<vmem>>, vector<8x128xf32>
    tpu.vector_store %arg10[%c0_49, %c0_50], %81 {strides = array<i32>} : memref<8x128xf32, #tpu.memory_space<vmem>>, vector<8x128xf32>,
    return
  }
}

</mosaic_0001>

<bundles_post_ra>
// kernel: network_forward.1
= control target key start
LH: loop header
LB: loop body
LE: loop exit
PB: predicated region body
PF: predicated region fallthrough
CT: control target
= control target key end

     0   :  { %v1037_v0 = vmov 0.0   ;;  %vm1038_vm0 = vmmov 0   ;;  %vm63_vm1 = vcmask 588800   ;;  %vm421_vm2 = vcmask 1043456   ;;  %s1407_s1 = inlined_call_operand.vmem [shape: f32[3,72,128], index: 1, kind: input, shape index: {}]   ;;  %s1408_s0 = inlined_call_operand.vmem [shape: f32[40,72], index: 0, kind: input, shape index: {}]   ;;  %s1409_s4 = inlined_call_operand.vmem [shape: f32[128,32], index: 4, kind: input, shape index: {}]   ;;  %s1410_s2 = inlined_call_operand.vmem [shape: f32[1,128], index: 2, kind: input, shape index: {}]   ;;  %s1411_s3 = inlined_call_operand.vmem [shape: f32[8,36], index: 3, kind: input, shape index: {}]   ;;  %s1412_s6 = inlined_call_operand.vmem [shape: f32[32,128], index: 6, kind: input, shape index: {}]   ;;  %s1413_s5 = inlined_call_operand.vmem [shape: f32[1,32], index: 5, kind: input, shape index: {}]   ;;  %s1414_s7 = inlined_call_operand.vmem [shape: f32[8,128], index: 7, kind: input, shape index: {}]   ;;  %s1415_s9 = inlined_call_operand.vmem [shape: f32[8,128], index: 9, kind: output, shape index: {0}]   ;;  %s1416_s8 = inlined_call_operand.vmem [shape: f32[8,2], index: 8, kind: input, shape index: {}]   ;;  %s1417_s10 = inlined_call_operand.vmem [shape: f32[8,128], index: 10, kind: output, shape index: {1}]  }
   0x1   :  { %866 = vmatprep.subr.mxu1 %v1037_v0  ;;  %v766_v1 = vld [vmem:[%s1407_s1 + $0x88] sm:$0xff]  ;;  %v765_v2 = vld [vmem:[%s1407_s1 + $0x80] sm:$0xff]  ;;  %884 = vmatprep.mubr.msk.f32.mxu1 %vm1038_vm0, %v1037_v0  ;;  %v764_v3 = vld [vmem:[%s1407_s1 + $0x78] sm:$0xff]  ;;  %vm417_vm3 = vcmask 293888   ;;  %vm589_vm4 = vcmask 261120   ;;  %vm720_vm5 = vcmask 15368  }
   0x2   :  { %867 = vmatpush3.msra.mxu1 %v766_v1  ;;  %932 = vmatprep.subr.mxu0 %v1037_v0  ;;  %v785_v4 = vld [vmem:[%s1407_s1 + $0xd0] sm:$0xff]  ;;  %v784_v6 = vld [vmem:[%s1407_s1 + $0xc8] sm:$0xff]  ;;  %v783_v7 = vld [vmem:[%s1407_s1 + $0xc0] sm:$0xff]  ;;  %vm702_vm6 = vcmask 7168  }
   0x3   :  { %868 = vmatprep.subr.mxu1 %v1037_v0  ;;  %950 = vmatprep.mubr.msk.f32.mxu0 %vm1038_vm0, %v1037_v0  ;;  %v763_v5 = vld [vmem:[%s1407_s1 + $0x70] sm:$0xff]  ;;  %v762_v8 = vld [vmem:[%s1407_s1 + $0x68] sm:$0xff]  ;;  %v782_v9 = vld [vmem:[%s1407_s1 + $0xb8] sm:$0xff] }
   0x4   :  { %869 = vmatpush3.msra.mxu1 %v765_v2  ;;  %933 = vmatpush3.msra.mxu0 %v785_v4  ;;  %v761_v10 = vld [vmem:[%s1407_s1 + $0x60] sm:$0xff]  ;;  %v781_v11 = vld [vmem:[%s1407_s1 + $0xb0] sm:$0xff]  ;;  %v760_v12 = vld [vmem:[%s1407_s1 + $0x58] sm:$0xff] }
   0x5   :  { %870 = vmatprep.subr.mxu1 %v1037_v0  ;;  %934 = vmatprep.subr.mxu0 %v1037_v0  ;;  %v780_v13 = vld [vmem:[%s1407_s1 + $0xa8] sm:$0xff]  ;;  %v759_v14 = vld [vmem:[%s1407_s1 + $0x50] sm:$0xff]  ;;  %v779_v15 = vld [vmem:[%s1407_s1 + $0xa0] sm:$0xff] }
   0x6   :  { %871 = vmatpush3.msra.mxu1 %v764_v3  ;;  %935 = vmatpush3.msra.mxu0 %v784_v6  ;;  %v758_v16 = vld [vmem:[%s1407_s1 + $0x48] sm:$0xff]  ;;  %v47_v18 = vld [vmem:[%s1407_s1 + $0x40] sm:$0xff]  ;;  %v778_v19 = vld [vmem:[%s1407_s1 + $0x98] sm:$0xff] }
   0x7   :  { %872 = vmatprep.subr.mxu1 %v1037_v0  ;;  %936 = vmatprep.subr.mxu0 %v1037_v0  ;;  %v48_v17 = vld [vmem:[%s1408_s0 + $0x1] sm:$0xff]  ;;  %v46_v20 = vld [vmem:[%s1407_s1 + $0x38] sm:$0xff]  ;;  %v49_v21 = vld [vmem:[%s1408_s0 + $0x9] sm:$0xff] }
   0x8   :  { %873 = vmatpush3.msra.mxu1 %v763_v5  ;;  %937 = vmatpush3.msra.mxu0 %v783_v7  ;;  %v45_v22 = vld [vmem:[%s1407_s1 + $0x30] sm:$0xff]  ;;  %v44_v24 = vld [vmem:[%s1407_s1 + $0x28] sm:$0xff]  ;;  %v43_v27 = vld [vmem:[%s1407_s1 + $0x20] sm:$0xff] }
   0x9   :  { %874 = vmatprep.subr.mxu1 %v1037_v0  ;;  %938 = vmatprep.subr.mxu0 %v1037_v0  ;;  %v777_v23 = vld [vmem:[%s1407_s1 + $0x90] sm:$0xff]  ;;  %v274_v25 = vld [vmem:[%s1408_s0 + $0x2] sm:$0xff]  ;;  %v42_v28 = vld [vmem:[%s1407_s1 + $0x18] sm:$0xff] }
   0xa   :  { %875 = vmatpush3.msra.mxu1 %v762_v8  ;;  %939 = vmatpush3.msra.mxu0 %v782_v9  ;;  %v50_v26 = vld [vmem:[%s1408_s0 + $0x11] sm:$0xff]  ;;  %v51_v30 = vld [vmem:[%s1408_s0 + $0x19] sm:$0xff]  ;;  %v40_v32 = vld [vmem:[%s1407_s1 + $0x8] sm:$0xff] }
   0xb   :  { %876 = vmatprep.subr.mxu1 %v1037_v0  ;;  %940 = vmatprep.subr.mxu0 %v1037_v0  ;;  %v275_v29 = vld [vmem:[%s1408_s0 + $0xa] sm:$0xff]  ;;  %v276_v33 = vld [vmem:[%s1408_s0 + $0x12] sm:$0xff]  ;;  %v52_v34 = vld [vmem:[%s1408_s0 + $0x21] sm:$0xf] }
   0xc   :  { %877 = vmatpush3.msra.mxu1 %v761_v10  ;;  %941 = vmatpush3.msra.mxu0 %v781_v11  ;;  %v41_v31 = vld [vmem:[%s1407_s1 + $0x10] sm:$0xff]  ;;  %v39_v35 = vld [vmem:[%s1407_s1] sm:$0xff]  ;;  %v35_v39 = vld [vmem:[%s1408_s0 + $0x8] sm:$0xff] }
   0xd   :  { %878 = vmatprep.subr.mxu1 %v1037_v0  ;;  %942 = vmatprep.subr.mxu0 %v1037_v0  ;;  %v277_v36 = vld [vmem:[%s1408_s0 + $0x1a] sm:$0xff]  ;;  %v278_v38 = vld [vmem:[%s1408_s0 + $0x22] sm:$0xf]  ;;  %v36_v40 = vld [vmem:[%s1408_s0 + $0x10] sm:$0xff] }
   0xe   :  { %879 = vmatpush3.msra.mxu1 %v760_v12  ;;  %943 = vmatpush3.msra.mxu0 %v780_v13  ;;  %v34_v37 = vld [vmem:[%s1408_s0] sm:$0xff]  ;;  %v37_v41 = vld [vmem:[%s1408_s0 + $0x18] sm:$0xff]  ;;  %v509_v44 = vld [vmem:[%s1409_s4 + $0x70] sm:$0xff] }
   0xf   :  { %880 = vmatprep.subr.mxu1 %v1037_v0  ;;  %944 = vmatprep.subr.mxu0 %v1037_v0  ;;  %v38_v42 = vld [vmem:[%s1408_s0 + $0x20] sm:$0xf]  ;;  %v510_v43 = vld [vmem:[%s1409_s4 + $0x78] sm:$0xff]  ;;  %v508_v45 = vld [vmem:[%s1409_s4 + $0x68] sm:$0xff] }
  0x10   :  { %881 = vmatpush3.msra.mxu1 %v759_v14  ;;  %945 = vmatpush3.msra.mxu0 %v779_v15  ;;  %v507_v46 = vld [vmem:[%s1409_s4 + $0x60] sm:$0xff]  ;;  %v506_v47 = vld [vmem:[%s1409_s4 + $0x58] sm:$0xff]  ;;  %v505_v48 = vld [vmem:[%s1409_s4 + $0x50] sm:$0xff] }
  0x11   :  { %882 = vmatprep.subr.mxu1 %v1037_v0  ;;  %946 = vmatprep.subr.mxu0 %v1037_v0  ;;  %v504_v49 = vld [vmem:[%s1409_s4 + $0x48] sm:$0xff]  ;;  %v503_v50 = vld [vmem:[%s1409_s4 + $0x40] sm:$0xff]  ;;  %v502_v51 = vld [vmem:[%s1409_s4 + $0x38] sm:$0xff] }
  0x12   :  { %883 = vmatpush3.msra.mxu1 %v758_v16  ;;  %947 = vmatpush3.msra.mxu0 %v778_v19  ;;  %v501_v52 = vld [vmem:[%s1409_s4 + $0x30] sm:$0xff]  ;;  %v500_v53 = vld [vmem:[%s1409_s4 + $0x28] sm:$0xff]  ;;  %v499_v54 = vld [vmem:[%s1409_s4 + $0x20] sm:$0xff] }
  0x13   :  { %885 = vmatmul.mubr.msk.f32.vlgmr.msra.gmra.mxu1 %vm63_vm1, %v48_v17  ;;  %899 = vmatprep.subr.mxu1 %v1037_v0  ;;  %v498_v55 = vld [vmem:[%s1409_s4 + $0x18] sm:$0xff]  ;;  %v497_v56 = vld [vmem:[%s1409_s4 + $0x10] sm:$0xff]  ;;  %v496_v57 = vld [vmem:[%s1409_s4 + $0x8] sm:$0xff] }
  0x14   :  { %887 = vmatprep.mubr.msk.f32.mxu1 %vm1038_vm0, %v1037_v0  ;;  %900 = vmatpush3.msra.mxu1 %v47_v18 }
  0x15   :  { %901 = vmatprep.subr.mxu1 %v1037_v0  ;;  %948 = vmatprep.subr.mxu0 %v1037_v0 }
  0x16   :  { %902 = vmatpush3.msra.mxu1 %v46_v20  ;;  %949 = vmatpush3.msra.mxu0 %v777_v23 }
  0x17   :  { %888 = vmatmul.mubr.msk.f32.gmra.mxu1 %vm63_vm1, %v49_v21  ;;  %903 = vmatprep.subr.mxu1 %v1037_v0 }
  0x18   :  { %890 = vmatprep.mubr.msk.f32.mxu1 %vm1038_vm0, %v1037_v0  ;;  %904 = vmatpush3.msra.mxu1 %v45_v22 }
  0x19   :  { %905 = vmatprep.subr.mxu1 %v1037_v0  ;;  %951 = vmatmul.mubr.msk.f32.vlgmr.msra.gmra.mxu0 %vm63_vm1, %v274_v25 }
  0x1a   :  { %906 = vmatpush3.msra.mxu1 %v44_v24  ;;  %953 = vmatprep.mubr.msk.f32.mxu0 %vm1038_vm0, %v1037_v0 }
  0x1b   :  { %891 = vmatmul.mubr.msk.f32.gmra.mxu1 %vm63_vm1, %v50_v26  ;;  %907 = vmatprep.subr.mxu1 %v1037_v0 }
  0x1c   :  { %893 = vmatprep.mubr.msk.f32.mxu1 %vm1038_vm0, %v1037_v0  ;;  %908 = vmatpush3.msra.mxu1 %v43_v27 }
  0x1d   :  { %909 = vmatprep.subr.mxu1 %v1037_v0  ;;  %954 = vmatmul.mubr.msk.f32.gmra.mxu0 %vm63_vm1, %v275_v29 }
  0x1e   :  { %910 = vmatpush3.msra.mxu1 %v42_v28  ;;  %956 = vmatprep.mubr.msk.f32.mxu0 %vm1038_vm0, %v1037_v0 }
  0x1f   :  { %894 = vmatmul.mubr.msk.f32.gmra.mxu1 %vm63_vm1, %v51_v30  ;;  %911 = vmatprep.subr.mxu1 %v1037_v0 }
  0x20   :  { %896 = vmatprep.mubr.msk.f32.mxu1 %vm1038_vm0, %v1037_v0  ;;  %912 = vmatpush3.msra.mxu1 %v41_v31 }
  0x21   :  { %913 = vmatprep.subr.mxu1 %v1037_v0  ;;  %957 = vmatmul.mubr.msk.f32.gmra.mxu0 %vm63_vm1, %v276_v33  ;;  %v791_v33 = vld [vmem:[%s1410_s2] ss:$0 sm:$0xff] }
  0x22   :  { %914 = vmatpush3.msra.mxu1 %v40_v32  ;;  %959 = vmatprep.mubr.msk.f32.mxu0 %vm1038_vm0, %v1037_v0 }
  0x23   :  { %897 = vmatmul.mubr.msk.f32.gmra.mxu1 %vm63_vm1, %v52_v34  ;;  %915 = vmatprep.subr.mxu1 %v1037_v0 }
  0x24   :  { %916 = vmatpush3.msra.mxu1 %v39_v35  ;;  %917 = vmatprep.mubr.msk.f32.mxu1 %vm1038_vm0, %v1037_v0 }
  0x25   :  { %965 = vmatprep.subr.mxu1 %v1037_v0  ;;  %960 = vmatmul.mubr.msk.f32.gmra.mxu0 %vm63_vm1, %v277_v36 }
  0x26   :  { %978 = vmatprep.subr.mxu0 %v1037_v0  ;;  %962 = vmatprep.mubr.msk.f32.mxu0 %vm1038_vm0, %v1037_v0 }
  0x27   :  { %918 = vmatmul.mubr.msk.f32.vlgmr.msra.gmra.mxu1 %vm63_vm1, %v34_v37  ;;  %979 = vmatpush3.msra.mxu0 %v510_v43 }
  0x28   :  { %920 = vmatprep.mubr.msk.f32.mxu1 %vm1038_vm0, %v1037_v0  ;;  %980 = vmatprep.subr.mxu0 %v1037_v0 }
  0x29   :  { %963 = vmatmul.mubr.msk.f32.gmra.mxu0 %vm63_vm1, %v278_v38 }
  0x2a   :  { %1010 = vmatprep.mubr.msk.f32.mxu0 %vm1038_vm0, %v1037_v0  ;;  %981 = vmatpush3.msra.mxu0 %v509_v44 }
  0x2b   :  { %921 = vmatmul.mubr.msk.f32.gmra.mxu1 %vm63_vm1, %v35_v39  ;;  %982 = vmatprep.subr.mxu0 %v1037_v0 }
  0x2c   :  { %923 = vmatprep.mubr.msk.f32.mxu1 %vm1038_vm0, %v1037_v0  ;;  %983 = vmatpush3.msra.mxu0 %v508_v45 }
  0x2d   :  { %984 = vmatprep.subr.mxu0 %v1037_v0 }
  0x2e   :  { %985 = vmatpush3.msra.mxu0 %v507_v46  ;;  %v416_v46 = vld [vmem:[%s1411_s3] sm:$0xff] }
  0x2f   :  { %924 = vmatmul.mubr.msk.f32.gmra.mxu1 %vm63_vm1, %v36_v40  ;;  %986 = vmatprep.subr.mxu0 %v1037_v0 }
  0x30   :  { %926 = vmatprep.mubr.msk.f32.mxu1 %vm1038_vm0, %v1037_v0  ;;  %987 = vmatpush3.msra.mxu0 %v506_v47  ;;  %v495_v47 = vld [vmem:[%s1409_s4] sm:$0xff] }
  0x31   :  { %988 = vmatprep.subr.mxu0 %v1037_v0 }
  0x32   :  { %989 = vmatpush3.msra.mxu0 %v505_v48 }
  0x33   :  { %927 = vmatmul.mubr.msk.f32.gmra.mxu1 %vm63_vm1, %v37_v41  ;;  %990 = vmatprep.subr.mxu0 %v1037_v0 }
  0x34   :  { %929 = vmatprep.mubr.msk.f32.mxu1 %vm1038_vm0, %v1037_v0  ;;  %991 = vmatpush3.msra.mxu0 %v504_v49 }
  0x35   :  { %992 = vmatprep.subr.mxu0 %v1037_v0 }
  0x36   :  { %993 = vmatpush3.msra.mxu0 %v503_v50  ;;  %v596_v50 = vld [vmem:[%s1412_s6] sm:$0xff] }
  0x37   :  { %930 = vmatmul.mubr.msk.f32.gmra.mxu1 %vm63_vm1, %v38_v42  ;;  %994 = vmatprep.subr.mxu0 %v1037_v0 }
  0x38   :  { %975 = vmatprep.mubr.msk.f32.mxu1 %vm1038_vm0, %v1037_v0  ;;  %995 = vmatpush3.msra.mxu0 %v502_v51  ;;  %v597_v51 = vld [vmem:[%s1412_s6 + $0x8] sm:$0xff] }
  0x39   :  { %996 = vmatprep.subr.mxu0 %v1037_v0 }
  0x3a   :  { %997 = vmatpush3.msra.mxu0 %v501_v52  ;;  %v600_v52 = vmul.f32 %v596_v50, %v596_v50 }
  0x3b   :  { %998 = vmatprep.subr.mxu0 %v1037_v0 }
  0x3c   :  { %999 = vmatpush3.msra.mxu0 %v500_v53  ;;  %v601_v53 = vmul.f32 %v597_v51, %v597_v51 }
  0x3d   :  { %1000 = vmatprep.subr.mxu0 %v1037_v0 }
  0x3e   :  { %1001 = vmatpush3.msra.mxu0 %v499_v54  ;;  %v598_v54 = vld [vmem:[%s1412_s6 + $0x10] sm:$0xff] }
  0x3f   :  { %1002 = vmatprep.subr.mxu0 %v1037_v0 }
  0x40   :  { %1003 = vmatpush3.msra.mxu0 %v498_v55  ;;  %v602_v55 = vmul.f32 %v598_v54, %v598_v54 }
  0x41   :  { %1004 = vmatprep.subr.mxu0 %v1037_v0 }
  0x42   :  { %1005 = vmatpush3.msra.mxu0 %v497_v56  ;;  %v604_v56 = vadd.f32 %v601_v53, %v600_v52 }
  0x43   :  { %1006 = vmatprep.subr.mxu0 %v1037_v0 }
  0x44   :  { %1007 = vmatpush3.msra.mxu0 %v496_v57  ;;  %v599_v57 = vld [vmem:[%s1412_s6 + $0x18] sm:$0xff] }
  0x45   :  { %1008 = vmatprep.subr.mxu0 %v1037_v0 }
  0x46   :  { %1009 = vmatpush3.msra.mxu0 %v495_v47 }
  0x47   :  { %1013 = vmatprep.subr.mxu0 %v1037_v0 }
  0xd3   :  { %v145_v58 = vpop.f32.mrf.mxu1 }
  0xd5   :  { %v886_v59 = vpop.f32.mrf.mxu1 }
  0xd6   :  { %v605_v59 = vadd.f32 %v604_v56, %v602_v55 }
  0xd7   :  { %v150_v60 = vpop.f32.mrf.mxu1 }
  0xd9   :  { %v889_v61 = vpop.f32.mrf.mxu1  ;;  %v370_v62 = vpop.f32.mrf.mxu0 }
  0xdb   :  { %v155_v63 = vpop.f32.mrf.mxu1  ;;  %v952_v1 = vpop.f32.mrf.mxu0 }
  0xdd   :  { %v892_v2 = vpop.f32.mrf.mxu1  ;;  %v375_v3 = vpop.f32.mrf.mxu0 }
  0xdf   :  { %v160_v4 = vpop.f32.mrf.mxu1  ;;  %v955_v5 = vpop.f32.mrf.mxu0 }
  0xe1   :  { %v895_v6 = vpop.f32.mrf.mxu1  ;;  %v380_v7 = vpop.f32.mrf.mxu0 }
  0xe3   :  { %v165_v8 = vpop.f32.mrf.mxu1  ;;  %v958_v9 = vpop.f32.mrf.mxu0 }
  0xe5   :  { %v898_v10 = vpop.f32.mrf.mxu1  ;;  %v385_v11 = vpop.f32.mrf.mxu0 }
  0xe7   :  { %v250_v12 = vpop.f32.mrf.mxu1  ;;  %v961_v13 = vpop.f32.mrf.mxu0 }
  0xe8   :  { %v251_v30 = vadd.f32 %v250_v12, %v145_v58  ;;  %v603_v58 = vmul.f32 %v599_v57, %v599_v57 }
  0xe9   :  { %v919_v14 = vpop.f32.mrf.mxu1  ;;  %v390_v15 = vpop.f32.mrf.mxu0 }
  0xea   :  { %v394_v37 = vadd.f32 %v370_v62, %v251_v30  ;;  %v794_v62 = vld [vmem:[%s1413_s5] ss:$0 sm:$0xff] }
  0xeb   :  { %v255_v16 = vpop.f32.mrf.mxu1  ;;  %v964_v17 = vpop.f32.mrf.mxu0 }
  0xec   :  { %v256_v26 = vadd.f32 %v255_v16, %v150_v60  ;;  %v406_v42 = vadd.f32 %v791_v33, %v394_v37  ;;  %v606_v60 = vadd.f32 %v605_v59, %v603_v58 }
  0xed   :  { %v922_v18 = vpop.f32.mrf.mxu1 }
  0xee   :  { %v395_v34 = vadd.f32 %v375_v3, %v256_v26  ;;  %v411_v45 = vmax.f32 %v406_v42, 0.0  ;;  %v607_v61 = vrot.slane %v606_v60, 4 }
  0xef   :  { %v260_v19 = vpop.f32.mrf.mxu1 }
  0xf0   :  { %v261_v24 = vadd.f32 %v260_v19, %v155_v63  ;;  %v407_v40 = vadd.f32 %v791_v33, %v395_v34  ;;  %v608_v63 = vadd.f32 %v607_v61, %v606_v60 }
  0xf1   :  { %v925_v20 = vpop.f32.mrf.mxu1 }
  0xf2   :  { %v396_v31 = vadd.f32 %v380_v7, %v261_v24  ;;  %v412_v44 = vmax.f32 %v407_v40, 0.0  ;;  %v609_v3 = vrot.slane %v608_v63, 2  ;;  %v692_v20 = vld [vmem:[%s1414_s7] sm:$0xff]  ;;  %s1039_s7 = smov 127  }
  0xf3   :  { %v265_v21 = vpop.f32.mrf.mxu1 }
  0xf4   :  { %v266_v22 = vadd.f32 %v265_v21, %v160_v4  ;;  %v408_v38 = vadd.f32 %v791_v33, %v396_v31  ;;  %v610_v6 = vadd.f32 %v609_v3, %v608_v63  ;;  %v693_v21 = vmul.f32 0.2, %v692_v20 }
  0xf5   :  { %v928_v23 = vpop.f32.mrf.mxu1 }
  0xf6   :  { %v397_v27 = vadd.f32 %v385_v11, %v266_v22  ;;  %v413_v43 = vmax.f32 %v408_v38, 0.0 }
  0xf7   :  { %v270_v25 = vpop.f32.mrf.mxu1 }
  0xf8   :  { %v271_v28 = vadd.f32 %v270_v25, %v165_v8  ;;  %v409_v35 = vadd.f32 %v791_v33, %v397_v27  ;;  %v611_v8 = vrot.slane %v610_v6, 1 }
  0xf9   :  { %v931_v29 = vpop.f32.mrf.mxu1 }
  0xfa   :  { %v398_v32 = vadd.f32 %v390_v15, %v271_v28  ;;  %v414_v41 = vmax.f32 %v409_v35, 0.0  ;;  %v612_v9 = vadd.f32 %v611_v8, %v610_v6 }
  0xfc   :  { %v410_v36 = vadd.f32 %v791_v33, %v398_v32  ;;  %v613_v10 = vadd.f32 1e-06, %v612_v9 }
  0xfe   :  { %v415_v39 = vmax.f32 %v410_v36, 0.0  ;;  %1029 = vrsqrt.f32 %v613_v10 }
 0x100   :  { %966 = vmatpush3.msk.msra.mxu1 %vm421_vm2, %v415_v39 }
 0x101   :  { %967 = vmatprep.subr.mxu1 %v1037_v0 }
 0x102   :  { %968 = vmatpush3.msra.mxu1 %v414_v41 }
 0x103   :  { %969 = vmatprep.subr.mxu1 %v1037_v0 }
 0x104   :  { %970 = vmatpush3.msra.mxu1 %v413_v43 }
 0x105   :  { %971 = vmatprep.subr.mxu1 %v1037_v0 }
 0x106   :  { %972 = vmatpush3.msra.mxu1 %v412_v44 }
 0x107   :  { %973 = vmatprep.subr.mxu1 %v1037_v0 }
 0x108   :  { %974 = vmatpush3.msra.mxu1 %v411_v45 }
 0x109   :  { %976 = vmatmul.mubr.msk.f32.vlgmr.msra.gmra.mxu1 %vm417_vm3, %v416_v46 }
 0x10b   :  { %v1030_v11 = vpop.eup %1029 }
 0x10c   :  { %v618_v12 = vmul.f32 %v1030_v11, %v599_v57  ;;  %v617_v13 = vmul.f32 %v1030_v11, %v598_v54  ;;  %v616_v14 = vmul.f32 %v1030_v11, %v597_v51  ;;  %v615_v15 = vmul.f32 %v1030_v11, %v596_v50 }
 0x1c9   :  { %v491_v48 = vpop.f32.mrf.mxu1 }
 0x1ca   :  { %1011 = vmatmul.mubr.f32.vlgmr.msra.gmra.mxu0 %v491_v48 }
 0x1cb   :  { %v977_v49 = vpop.f32.mrf.mxu1  ;;  %1021 = vmatprep.mubr.msk.f32.mxu0 %vm1038_vm0, %v1037_v0  ;;  %1014 = vmatpush3.msra.mxu0 %v618_v12 }
 0x1cc   :  { %1015 = vmatprep.subr.mxu0 %v1037_v0 }
 0x1cd   :  { %1016 = vmatpush3.msra.mxu0 %v617_v13 }
 0x1ce   :  { %1017 = vmatprep.subr.mxu0 %v1037_v0 }
 0x1cf   :  { %1018 = vmatpush3.msra.mxu0 %v616_v14 }
 0x1d0   :  { %1019 = vmatprep.subr.mxu0 %v1037_v0  ;;  %v700_v0 = vld [vmem:[%s1416_s8] sm:$0xff] }
 0x1d1   :  { %1020 = vmatpush3.msra.mxu0 %v615_v15  ;;  %v728_v27 = vsel %vm720_vm5, %v700_v0, 0.0  ;;  %v710_v46 = vsel %vm702_vm6, %v700_v0, 0.0 }
 0x1d2   :  { %v729_v28 = vrot.slane %v728_v27, 4  ;;  %v711_v47 = vrot.slane %v710_v46, 4 }
 0x1d4   :  { %v730_v29 = vadd.f32 %v729_v28, %v728_v27  ;;  %v712_v48 = vadd.f32 %v711_v47, %v710_v46 }
 0x1d6   :  { %v731_v30 = vrot.slane %v730_v29, 2  ;;  %v713_v49 = vrot.slane %v712_v48, 2 }
 0x1d8   :  { %v732_v31 = vadd.f32 %v731_v30, %v730_v29  ;;  %v714_v50 = vadd.f32 %v713_v49, %v712_v48 }
 0x1da   :  { %v733_v32 = vrot.slane %v732_v31, 1  ;;  %v715_v51 = vrot.slane %v714_v50, 1 }
 0x1dc   :  { %v734_v33 = vadd.f32 %v733_v32, %v732_v31  ;;  %v716_v53 = vadd.f32 %v715_v51, %v714_v50 }
 0x1de   :  { %v735_v34 = vadd.f32 1e-06, %v734_v33  ;;  %v717_v55 = vadd.f32 1e-06, %v716_v53 }
 0x28a   :  { %v584_v1 = vpop.f32.mrf.mxu0 }
 0x28b   :  { %v585_v2 = vadd.f32 %v794_v62, %v584_v1 }
 0x28c   :  { %v1012_v4 = vpop.f32.mrf.mxu0 }
 0x28d   :  { %v588_v5 = vmul.f32 %v585_v2, %v585_v2 }
 0x28f   :  { %v590_v7 = vsel %vm589_vm4, %v588_v5, 0.0 }
 0x290   :  { %591 = vadd.xlane.f32.xlu0 %v590_v7 }
 0x319   :  { %v592_v16 = vpop.xlane.xlu0 %591 }
 0x31a   :  { %v593_v17 = vadd.f32 1e-06, %v592_v16 }
 0x31c   :  { %1031 = vrsqrt.f32 %v593_v17 }
 0x31d   :  { %1033 = vrcp.f32 %v735_v34 }
 0x31e   :  { %1035 = vrcp.f32 %v717_v55 }
 0x329   :  { %v1032_v18 = vpop.eup %1031 }
 0x32a   :  { %v595_v19 = vmul.f32 %v1032_v18, %v585_v2  ;;  %v1034_v43 = vpop.eup %1033 }
 0x32b   :  { %v1036_v61 = vpop.eup %1035 }
 0x32c   :  { %1022 = vmatmul.mubr.msk.f32.vlgmr.msra.gmra.mxu0 %vm589_vm4, %v595_v19 }
 0x3ec   :  { %v688_v22 = vpop.f32.mrf.mxu0 }
 0x3ed   :  { %v694_v23 = vsub.f32 %v688_v22, %v693_v21  ;;  %v697_v24 = vmul.f32 %v692_v20, %v688_v22 }
 0x3ee   :  { %v1023_v25 = vpop.f32.mrf.mxu0 }
 0x3ef   :  { %v695_v26 = vmul.f32 16.0, %v694_v23  ;;  %698 = vadd.xlane.f32.xlu0 %v697_v24 }
 0x3f1   :  { %696 = vst [vmem:[%s1415_s9] sm:$0xff] %v695_v26 }
 0x478   :  { %v699_v35 = vpop.xlane.xlu0 %698 }
 0x479   :  { %v701_v36 = vmul.f32 %v700_v0, %v699_v35 }
 0x47b   :  { %v721_v37 = vsel %vm720_vm5, %v701_v36, 0.0  ;;  %v703_v52 = vsel %vm702_vm6, %v701_v36, 0.0 }
 0x47c   :  { %v722_v38 = vrot.slane %v721_v37, 4  ;;  %v704_v54 = vrot.slane %v703_v52, 4 }
 0x47e   :  { %v723_v39 = vadd.f32 %v722_v38, %v721_v37  ;;  %v705_v56 = vadd.f32 %v704_v54, %v703_v52 }
 0x480   :  { %v724_v40 = vrot.slane %v723_v39, 2  ;;  %v706_v57 = vrot.slane %v705_v56, 2 }
 0x482   :  { %v725_v41 = vadd.f32 %v724_v40, %v723_v39  ;;  %v707_v58 = vadd.f32 %v706_v57, %v705_v56 }
 0x484   :  { %v726_v42 = vrot.slane %v725_v41, 1  ;;  %v708_v59 = vrot.slane %v707_v58, 1 }
 0x486   :  { %v727_v44 = vadd.f32 %v726_v42, %v725_v41  ;;  %v709_v60 = vadd.f32 %v708_v59, %v707_v58 }
 0x488   :  { %v737_v45 = vmul.f32 %v1034_v43, %v727_v44  ;;  %v719_v62 = vmul.f32 %v1036_v61, %v709_v60 }
 0x48a   :  { %739 = vrot.lane.b32.xlu1 %v737_v45, %s1039_s7 }
 0x4fc   :  { %v740_v63 = vpop.permute.xlu1 %739 }
 0x4fd   :  { %v742_v1 = vsub.f32 %v719_v62, %v740_v63 }
 0x4ff   :  { %v743_v2 = vmul.f32 %v742_v1, %v742_v1 }
 0x501   :  { %1024 = vpush %v743_v2 }
 0x532   :  { %s1025_s8 = spop %1024 }
 0x533   :  { %v746_v3 = vstv %s1025_s8 }
 0x534   :  { %749 = vst [vmem:[%s1417_s10] sm:$0xff] %v746_v3 }

</bundles_post_ra>
